<compile_context>
chip_gen: v7x
topology: tpu7x:2x2x1
jax: 0.10.0
libtpu: 0.0.40
codegen_flags: <defaults>
</compile_context>

<pallas_src>
import jax
import jax.numpy as jnp
from jax.experimental import pallas as pl
from jax.experimental.pallas import tpu as pltpu

IN_FEATURES = 200      # 50 x 4 phase image, flattened
HIDDEN = 200
OUT_FEATURES = 50

HID_PAD = 256          # lane-dense hidden width (multiple of 128)
OUT_PAD = 128          # lane-dense output width (multiple of 128)

BLOCK_B = 1024         # batch-row tile; sweepable 1024-2048 (cap ~2048 on v5e)


def _round_up(n, m):
    return ((n + m - 1) // m) * m


def _mlp_kernel(x_ref, w1_ref, b1_ref, w2_ref, b2_ref, o_ref):
    # x arrives at its HBM dtype (f32 here; bf16/fp8 from an upstream producer
    # also works) -- the cast is hidden under the memory bound.
    x = x_ref[...].astype(jnp.bfloat16)                               # (TB, 200)
    h = jnp.dot(x, w1_ref[...], preferred_element_type=jnp.float32)   # (TB, 256) f32
    h = jnp.maximum(h + b1_ref[...], 0.0)                             # bias + ReLU
    y = jnp.dot(h.astype(jnp.bfloat16), w2_ref[...],
                preferred_element_type=jnp.float32)                    # (TB, 128) f32
    o_ref[...] = (y + b2_ref[...]).astype(o_ref.dtype)


def prepare_params(w1, b1, w2, b2):
    """One-time padding/cast of parameters to kernel layout (hoisted out of the
    per-call wrapper).  Weights are stored (in, out) so y = x @ W + b matches
    torch's y = x @ W_t.T + b."""
    w1_p = jnp.zeros((IN_FEATURES, HID_PAD), jnp.bfloat16)
    w1_p = w1_p.at[:, :HIDDEN].set(w1.astype(jnp.bfloat16))
    b1_p = jnp.zeros((1, HID_PAD), jnp.float32).at[:, :HIDDEN].set(
        b1.reshape(1, HIDDEN))
    w2_p = jnp.zeros((HID_PAD, OUT_PAD), jnp.bfloat16)
    w2_p = w2_p.at[:HIDDEN, :OUT_FEATURES].set(w2.astype(jnp.bfloat16))
    b2_p = jnp.zeros((1, OUT_PAD), jnp.float32).at[:, :OUT_FEATURES].set(
        b2.reshape(1, OUT_FEATURES))
    return w1_p, b1_p, w2_p, b2_p


def fast4phase_forward(x, w1_p, b1_p, w2_p, b2_p, *, block_b=BLOCK_B,
                       slice_output=True):
    """x: (B, 50, 4) -> logits (B, 50) float32 (or padded (B, 128) if
    slice_output=False, extra lanes are exactly zero)."""
    assert block_b % 8 == 0
    B = x.shape[0]
    x2 = x.reshape(B, IN_FEATURES)   # metadata-only reshape: no pad, no cast, no copy

    if B <= block_b:
        # >=2 grid steps as soon as B > 8 so v7x's two TensorCores both work.
        tb = max(8, _round_up(pl.cdiv(B, 2), 8))
    else:
        tb = block_b
    grid = (pl.cdiv(B, tb),)         # ragged last tile: Pallas partial-block masking

    # Advisory cost estimate with *true* (unpadded) dims.
    flops = 2 * B * (IN_FEATURES * HIDDEN + HIDDEN * OUT_FEATURES)
    bytes_accessed = (x2.size * x2.dtype.itemsize
                      + w1_p.size * 2 + w2_p.size * 2
                      + b1_p.size * 4 + b2_p.size * 4
                      + B * OUT_PAD * 4)

    out = pl.pallas_call(
        _mlp_kernel,
        out_shape=jax.ShapeDtypeStruct((B, OUT_PAD), jnp.float32),
        grid=grid,
        in_specs=[
            # x streamed over the batch, unpadded (200 == full last dim).
            pl.BlockSpec((tb, IN_FEATURES), lambda i: (i, 0)),
            # Weights / biases VMEM-resident via constant index_maps.
            pl.BlockSpec((IN_FEATURES, HID_PAD), lambda i: (0, 0)),
            pl.BlockSpec((1, HID_PAD), lambda i: (0, 0)),
            pl.BlockSpec((HID_PAD, OUT_PAD), lambda i: (0, 0)),
            pl.BlockSpec((1, OUT_PAD), lambda i: (0, 0)),
        ],
        # Lane-dense 128-wide output store (no masked partial vst).
        out_specs=pl.BlockSpec((tb, OUT_PAD), lambda i: (i, 0)),
        compiler_params=pltpu.CompilerParams(
            dimension_semantics=("parallel",)),
        cost_estimate=pl.CostEstimate(
            flops=flops, transcendentals=0, bytes_accessed=bytes_accessed),
    )(x2, w1_p, b1_p, w2_p, b2_p)

    if slice_output:
        return out[:, :OUT_FEATURES]
    return out


def init_params(key):
    """Deterministic synthetic parameters with nn.Linear-like init
    (uniform in +/- 1/sqrt(fan_in)); weights stored as (in, out)."""
    k1, k2, k3, k4 = jax.random.split(key, 4)
    bound1 = 1.0 / jnp.sqrt(IN_FEATURES)
    bound2 = 1.0 / jnp.sqrt(HIDDEN)
    w1 = jax.random.uniform(k1, (IN_FEATURES, HIDDEN), jnp.float32,
                            minval=-bound1, maxval=bound1)
    b1 = jax.random.uniform(k2, (HIDDEN,), jnp.float32,
                            minval=-bound1, maxval=bound1)
    w2 = jax.random.uniform(k3, (HIDDEN, OUT_FEATURES), jnp.float32,
                            minval=-bound2, maxval=bound2)
    b2 = jax.random.uniform(k4, (OUT_FEATURES,), jnp.float32,
                            minval=-bound2, maxval=bound2)
    return w1, b1, w2, b2


def _reference_bf16(x, w1, b1, w2, b2):
    """Matches the kernel's numerics: bf16 matmul operands, f32 accumulation."""
    x_flat = x.reshape(x.shape[0], -1).astype(jnp.bfloat16)
    h = jnp.dot(x_flat, w1.astype(jnp.bfloat16),
                preferred_element_type=jnp.float32) + b1
    h = jnp.maximum(h, 0.0)
    y = jnp.dot(h.astype(jnp.bfloat16), w2.astype(jnp.bfloat16),
                preferred_element_type=jnp.float32) + b2
    return y


def _reference_f32(x, w1, b1, w2, b2):
    x_flat = x.reshape(x.shape[0], -1)
    h = jnp.maximum(x_flat @ w1 + b1, 0.0)
    return h @ w2 + b2


if __name__ == "__main__":
    key = jax.random.PRNGKey(0)
    kx, kp = jax.random.split(key)

    w1, b1, w2, b2 = init_params(kp)
    params = prepare_params(w1, b1, w2, b2)   # padded once, reused per call

    fwd = jax.jit(fast4phase_forward)

    # B=16 -> 2 grid steps of 8 rows (exercises multi-step / v7x sharding path);
    # B=5  -> single ragged tile (exercises partial-block masking).
    for B in (16, 5):
        x = jax.random.normal(jax.random.fold_in(kx, B), (B, 50, 4), jnp.float32)
        logits = jax.block_until_ready(fwd(x, *params))

        assert logits.shape == (B, OUT_FEATURES)
        ref_bf16 = _reference_bf16(x, w1, b1, w2, b2)
        ref_f32 = _reference_f32(x, w1, b1, w2, b2)
        # Tight check vs identical bf16-matmul numerics.
        assert jnp.allclose(logits, ref_bf16, atol=2e-3, rtol=2e-3)
        # Loose sanity check vs the full-f32 PyTorch-equivalent reference.
        assert jnp.allclose(logits, ref_f32, atol=5e-2, rtol=5e-2)

    print("KERNEL_OK")
</pallas_src>

<mosaic_0001>
module attributes {stable_mosaic.version = 11 : i64} {
  func.func @_mlp_kernel(%arg0: i32, %arg1: memref<8x200xf32, #tpu.memory_space<vmem>>, %arg2: memref<200x256xbf16, #tpu.memory_space<vmem>>, %arg3: memref<1x256xf32, #tpu.memory_space<vmem>>, %arg4: memref<256x128xbf16, #tpu.memory_space<vmem>>, %arg5: memref<1x128xf32, #tpu.memory_space<vmem>>, %arg6: memref<8x128xf32, #tpu.memory_space<vmem>>) attributes {dimension_semantics = [#tpu.dimension_semantics<parallel>], iteration_bounds = array<i64: 2>, scalar_prefetch = 0 : i64, scratch_operands = 0 : i64, tpu.core_type = #tpu.core_type<tc>, window_params = [{transform_indices = @transform_0, window_bounds = array<i64: 8, 200>}, {pipeline_mode = #tpu.pipeline_mode<synchronous>, transform_indices = @transform_1, window_bounds = array<i64: 200, 256>}, {pipeline_mode = #tpu.pipeline_mode<synchronous>, transform_indices = @transform_2, window_bounds = array<i64: 1, 256>}, {pipeline_mode = #tpu.pipeline_mode<synchronous>, transform_indices = @transform_3, window_bounds = array<i64: 256, 128>}, {pipeline_mode = #tpu.pipeline_mode<synchronous>, transform_indices = @transform_4, window_bounds = array<i64: 1, 128>}, {transform_indices = @transform_5, window_bounds = array<i64: 8, 128>}]} {
    %c0 = arith.constant 0 : index
    %c0_0 = arith.constant 0 : index
    %0 = vector.load %arg1[%c0, %c0_0] : memref<8x200xf32, #tpu.memory_space<vmem>>, vector<8x200xf32>
    %1 = arith.truncf %0 : vector<8x200xf32> to vector<8x200xbf16>
    %c0_1 = arith.constant 0 : index
    %c0_2 = arith.constant 0 : index
    %2 = vector.load %arg2[%c0_1, %c0_2] : memref<200x256xbf16, #tpu.memory_space<vmem>>, vector<200x256xbf16>
    %cst = arith.constant dense<0.000000e+00> : vector<8x256xf32>
    %3 = tpu.matmul %1, %2, %cst {dimension_numbers = #tpu.dot_dimension_numbers<[1], [0], [0], [1], [0, 0, 1, 1], [], []>} : vector<8x200xbf16>, vector<200x256xbf16>, vector<8x256xf32> -> vector<8x256xf32>
    %c0_3 = arith.constant 0 : index
    %c0_4 = arith.constant 0 : index
    %4 = vector.load %arg3[%c0_3, %c0_4] : memref<1x256xf32, #tpu.memory_space<vmem>>, vector<1x256xf32>
    %5 = vector.broadcast %4 : vector<1x256xf32> to vector<8x256xf32>
    %6 = arith.addf %3, %5 : vector<8x256xf32>
    %cst_5 = arith.constant 0.000000e+00 : f32
    %7 = vector.broadcast %cst_5 : f32 to vector<8x256xf32>
    %8 = arith.maximumf %6, %7 : vector<8x256xf32>
    %9 = arith.truncf %8 : vector<8x256xf32> to vector<8x256xbf16>
    %c0_6 = arith.constant 0 : index
    %c0_7 = arith.constant 0 : index
    %10 = vector.load %arg4[%c0_6, %c0_7] : memref<256x128xbf16, #tpu.memory_space<vmem>>, vector<256x128xbf16>
    %cst_8 = arith.constant dense<0.000000e+00> : vector<8x128xf32>
    %11 = tpu.matmul %9, %10, %cst_8 {dimension_numbers = #tpu.dot_dimension_numbers<[1], [0], [0], [1], [0, 0, 1, 1], [], []>} : vector<8x256xbf16>, vector<256x128xbf16>, vector<8x128xf32> -> vector<8x128xf32>
    %c0_9 = arith.constant 0 : index
    %c0_10 = arith.constant 0 : index
    %12 = vector.load %arg5[%c0_9, %c0_10] : memref<1x128xf32, #tpu.memory_space<vmem>>, vector<1x128xf32>
    %13 = vector.broadcast %12 : vector<1x128xf32> to vector<8x128xf32>
    %14 = arith.addf %11, %13 : vector<8x128xf32>
    %c0_11 = arith.constant 0 : index
    %c0_12 = arith.constant 0 : index
    %15 = vector.load %arg6[%c0_11, %c0_12] : memref<8x128xf32, #tpu.memory_space<vmem>>, vector<8x128xf32>
    tpu.vector_store %arg6[%c0_11, %c0_12], %14 {strides = array<i32>} : memref<8x128xf32, #tpu.memory_space<vmem>>, vector<8x128xf32>,
    return
  }
  func.func @transform_0(%arg0: i32) -> (i32, i32) {
    %c0_i32 = arith.constant 0 : i32
    %c0_i32_0 = arith.constant 0 : i32
    return %arg0, %c0_i32 : i32, i32
  }
  func.func @transform_1(%arg0: i32) -> (i32, i32) {
    %c0_i32 = arith.constant 0 : i32
    %c0_i32_0 = arith.constant 0 : i32
    %c0_i32_1 = arith.constant 0 : i32
    return %c0_i32, %c0_i32_0 : i32, i32
  }
  func.func @transform_2(%arg0: i32) -> (i32, i32) {
    %c0_i32 = arith.constant 0 : i32
    %c0_i32_0 = arith.constant 0 : i32
    %c0_i32_1 = arith.constant 0 : i32
    return %c0_i32, %c0_i32_0 : i32, i32
  }
  func.func @transform_3(%arg0: i32) -> (i32, i32) {
    %c0_i32 = arith.constant 0 : i32
    %c0_i32_0 = arith.constant 0 : i32
    %c0_i32_1 = arith.constant 0 : i32
    return %c0_i32, %c0_i32_0 : i32, i32
  }
  func.func @transform_4(%arg0: i32) -> (i32, i32) {
    %c0_i32 = arith.constant 0 : i32
    %c0_i32_0 = arith.constant 0 : i32
    %c0_i32_1 = arith.constant 0 : i32
    return %c0_i32, %c0_i32_0 : i32, i32
  }
  func.func @transform_5(%arg0: i32) -> (i32, i32) {
    %c0_i32 = arith.constant 0 : i32
    %c0_i32_0 = arith.constant 0 : i32
    return %arg0, %c0_i32 : i32, i32
  }
}

</mosaic_0001>

<bundles_post_ra>
// kernel: fast4phase_forward.1
= control target key start
LH: loop header
LB: loop body
LE: loop exit
PB: predicated region body
PF: predicated region fallthrough
CT: control target
= control target key end

     0   :  { %10 = vsyncpa [#allocation3], 0  ;;  %s1195_s0 = inlined_call_operand.vmem [shape: f32[16,200], index: 0, kind: input, shape index: {}]   ;;  %s1196_s1 = inlined_call_operand.vmem [shape: bf16[200,256], index: 1, kind: input, shape index: {}]   ;;  %s1197_s2 = inlined_call_operand.vmem [shape: f32[1,256], index: 2, kind: input, shape index: {}]   ;;  %s1198_s3 = inlined_call_operand.vmem [shape: bf16[256,128], index: 3, kind: input, shape index: {}]   ;;  %s1199_s4 = inlined_call_operand.vmem [shape: f32[1,128], index: 4, kind: input, shape index: {}]   ;;  %s1200_s5 = inlined_call_operand.hbm [shape: f32[16,128], index: 5, kind: output, shape index: {}]  }
   0x1   :  { %12 = vsyncpa [#allocation3 + $0x1], 0  ;;  %s962_s18 = smov 0   ;;  %s964_s19 = smov 0  }
   0x2   :  { %s966_s20 = smov 0   ;;  %s968_s21 = smov 0  }
   0x3 LB: > { %s983_s22 = sadd.s32 4294967295, %s929_s21   ;;  %s695_s23 = sadd.s32 4294967294, %s929_s21   ;;  %s929_s21 = sphi %s968_s21, %s1206_s21   ;;  %s925_s20 = sphi %s966_s20, %s1205_s20   ;;  %s921_s19 = sphi %s964_s19, %s1204_s19   ;;  %s917_s18 = sphi %s962_s18, %s1203_s18  }
   0x4   : > { %s987_s24 = sadd.s32 1, %s929_s21   ;;  %s135_s25 = sadd.s32 1, %s925_s20 }
   0x5   : > { %s132_s26 = ssub.s32 %s929_s21, %s987_s24  ;;  %p145_p0 = scmp.ne.s32.totalorder %s925_s20, %s921_s19 }
   0x6   : > { %p133_p1 = scmp.eq.s32.totalorder %s132_s26, 0  ;;  %p146_p2 = scmp.eq.s32.totalorder %s983_s22, 1 }
   0x7   : > { %p151_p3 = scmp.ne.s32.totalorder %s921_s19, %s917_s18  ;;  %p152_p4 = scmp.eq.s32.totalorder %s695_s23, 1 }
   0x8   : > { %s998_s27 = scalar_select %p133_p1, %s925_s20, %s135_s25  }
   0x9   : > { %p1000_p5 = por %p146_p2, %p145_p0  ;;  %p1004_p6 = por %p152_p4, %p151_p3 }
   0xa   : > { %p698_p7 = scmp.ge.s32.totalorder %s929_s21, 1  ;;  %p190_p8 = scmp.lt.s32.totalorder %s929_s21, 3 }
   0xc   : > { %p191_p9 = pnand %p698_p7, %p190_p8 }
   0xd   : > { %v813_v0 = vld [vmem:[%s1196_s1 + $0x4] ss:$8 sps:$4 sm:$0xff] (!%p191_p9)   ;;  %v815_v1 = vld [vmem:[%s1196_s1] ss:$8 sps:$4 sm:$0xff] (!%p191_p9)   ;;  %v816_v2 = vld [vmem:[%s1196_s1 + $0x14] ss:$8 sps:$4 sm:$0xff] (!%p191_p9)   ;;  %v255_v48 = vlaneseq (!%p191_p9) }
   0xe   : > { %194 = sbr.rel (%p191_p9) target bundleno = 517 (0x205), region = 40  ;;  %401 = vmatprep.subr.bf16.mxu0 (!%p191_p9), %v813_v0  ;;  %p218_p10 = scmp.lt.s32.totalorder (!%p191_p9), %s983_s22, 1  ;;  %v818_v3 = vld [vmem:[%s1196_s1 + $0x10] ss:$8 sps:$4 sm:$0xff] (!%p191_p9)   ;;  %v819_v4 = vld [vmem:[%s1196_s1 + $0x24] ss:$8 sps:$4 sm:$0xff] (!%p191_p9)  }
   0xf   : > { %402 = vmatpush1.bf16.msra.mxu0 (!%p191_p9), %v815_v1  ;;  %v821_v5 = vld [vmem:[%s1196_s1 + $0x20] ss:$8 sps:$4 sm:$0xff] (!%p191_p9)   ;;  %v822_v6 = vld [vmem:[%s1196_s1 + $0x34] ss:$8 sps:$4 sm:$0xff] (!%p191_p9)   ;;  %v824_v7 = vld [vmem:[%s1196_s1 + $0x30] ss:$8 sps:$4 sm:$0xff] (!%p191_p9)  }
  0x10   : > { %403 = vmatprep.subr.bf16.mxu0 (!%p191_p9), %v816_v2  ;;  %v825_v8 = vld [vmem:[%s1196_s1 + $0x44] ss:$8 sps:$4 sm:$0xff] (!%p191_p9)   ;;  %v827_v9 = vld [vmem:[%s1196_s1 + $0x40] ss:$8 sps:$4 sm:$0xff] (!%p191_p9)   ;;  %v828_v10 = vld [vmem:[%s1196_s1 + $0x54] ss:$8 sps:$4 sm:$0xff] (!%p191_p9)  }
  0x11   : > { %vm390_vm0 = vcmask (!%p191_p9), 588800   ;;  %v830_v12 = vld [vmem:[%s1196_s1 + $0x50] ss:$8 sps:$4 sm:$0xff] (!%p191_p9)   ;;  %v851_v14 = vld [vmem:[%s1198_s3 + $0x40] sm:$0xff] (!%p191_p9)   ;;  %v853_v16 = vld [vmem:[%s1198_s3 + $0x48] sm:$0xff] (!%p191_p9)   ;;  %vm394_vm1 = vcmask (!%p191_p9), 1043456  }
  0x12   : > { %v852_v15 = vld [vmem:[%s1198_s3] sm:$0xff] (!%p191_p9)   ;;  %752 = vmatprep.subr.bf16.mxu1 (!%p191_p9), %v851_v14  ;;  %v854_v18 = vld [vmem:[%s1198_s3 + $0x8] sm:$0xff] (!%p191_p9)   ;;  %v855_v19 = vld [vmem:[%s1198_s3 + $0x50] sm:$0xff] (!%p191_p9)   ;;  %v256_v49 = vshrl.u32 (!%p191_p9), %v255_v48, 7  ;;  %s215_s17 = sand.u32 (!%p191_p9), 1, %s921_s19   ;;  %s748_s30 = sshll.u32 (!%p191_p9), %s983_s22, 7 }
  0x13   : > { %404 = vmatpush1.bf16.msra.mxu0 (!%p191_p9), %v818_v3  ;;  %v831_v17 = vld [vmem:[%s1196_s1 + $0x64] ss:$8 sps:$4 sm:$0xff] (!%p191_p9)   ;;  %753 = vmatpush3.bf16.msra.mxu1 (!%p191_p9), %v852_v15  ;;  %v833_v20 = vld [vmem:[%s1196_s1 + $0x60] ss:$8 sps:$4 sm:$0xff] (!%p191_p9)   ;;  %v834_v21 = vld [vmem:[%s1196_s1 + $0x74] ss:$8 sps:$4 sm:$0xff] (!%p191_p9)   ;;  %s1153_s10 = scalar_lea.hbm (!%p191_p9), %s1200_s5, %s748_s30 }
  0x14   : > { %405 = vmatprep.subr.bf16.mxu0 (!%p191_p9), %v819_v4  ;;  %754 = vmatprep.subr.bf16.mxu1 (!%p191_p9), %v853_v16  ;;  %v836_v22 = vld [vmem:[%s1196_s1 + $0x70] ss:$8 sps:$4 sm:$0xff] (!%p191_p9)   ;;  %v837_v25 = vld [vmem:[%s1196_s1 + $0x84] ss:$8 sps:$4 sm:$0xff] (!%p191_p9)   ;;  %v839_v27 = vld [vmem:[%s1196_s1 + $0x80] ss:$8 sps:$4 sm:$0xff] (!%p191_p9)  }
  0x15   : > { %s219_s15 = scalar_select %p218_p10, %s983_s22, 1  ;;  %v856_v23 = vld [vmem:[%s1198_s3 + $0x10] sm:$0xff]   ;;  %v857_v24 = vld [vmem:[%s1198_s3 + $0x58] sm:$0xff]   ;;  %v859_v28 = vld [vmem:[%s1198_s3 + $0x60] sm:$0xff]   ;;  %v257_v50 = vsub.s32 0, %v256_v49  ;;  %v261_v52 = vsub.s32 1, %v256_v49 }
  0x16   : > { %v858_v26 = vld [vmem:[%s1198_s3 + $0x18] sm:$0xff]   ;;  %v860_v30 = vld [vmem:[%s1198_s3 + $0x20] sm:$0xff]   ;;  %v861_v31 = vld [vmem:[%s1198_s3 + $0x68] sm:$0xff]   ;;  %s699_s23 = sshll.u32 %s215_s17, 3  ;;  %s623_s12 = scalar_lea.sflag [#allocation3], %s215_s17 }
  0x17   : > { %s751_s26 = sshll.u32 %s219_s15, 4  ;;  %406 = vmatpush1.bf16.msra.mxu0 %v821_v5  ;;  %755 = vmatpush3.bf16.msra.mxu1 %v854_v18  ;;  %v840_v29 = vld [vmem:[%s1196_s1 + $0x94] ss:$8 sps:$4 sm:$0xff]   ;;  %v842_v32 = vld [vmem:[%s1196_s1 + $0x90] ss:$8 sps:$4 sm:$0xff]   ;;  %v862_v34 = vld [vmem:[%s1198_s3 + $0x28] sm:$0xff]  }
  0x18   : > { %407 = vmatprep.subr.bf16.mxu0 %v822_v6  ;;  %s1042_s11 = scalar_lea.vmem %s1195_s0, %s751_s26  ;;  %756 = vmatprep.subr.bf16.mxu1 %v855_v19  ;;  %v843_v33 = vld [vmem:[%s1196_s1 + $0xa4] ss:$8 sps:$4 sm:$0xff]   ;;  %v845_v35 = vld [vmem:[%s1196_s1 + $0xa0] ss:$8 sps:$4 sm:$0xff]   ;;  %v846_v36 = vld [vmem:[%s1196_s1 + $0xb4] ss:$8 sps:$4 sm:$0xff]  }
  0x19   : > { %v225_v11 = vld [vmem:[%s1042_s11 + $0x8] sm:$0xff]  ;;  %v252_v37 = vld [vmem:[%s1196_s1 + $0xc0] sm:$0xff]  ;;  %v848_v38 = vld [vmem:[%s1196_s1 + $0xb0] ss:$8 sps:$4 sm:$0xff]   ;;  %s217_s6 = scalar_lea.vmem [#allocation2], %s699_s23  ;;  %s931_s22 = smov [#allocation2]  }
  0x1a   : > { %v227_v13 = vpack.c.bf16 %v225_v11, %v225_v11  ;;  %v727_v39 = vcombine.high %v252_v37, %v252_v37  ;;  %v726_v40 = vcombine.low %v252_v37, %v252_v37  ;;  %v224_v41 = vld [vmem:[%s1042_s11] sm:$0xff]  ;;  %v863_v44 = vld [vmem:[%s1198_s3 + $0x70] sm:$0xff]   ;;  %v865_v46 = vld [vmem:[%s1198_s3 + $0x78] sm:$0xff]   ;;  %s636_s7 = sshll.u32 %s217_s6, 4  ;;  %s871_s11 = sshll.u32 %s931_s22, 4  ;;  %s1155_s7 = int_to_ptr.vmem [resolvable:$true] %s636_s7  ;;  %s872_s11 = int_to_ptr.vmem [resolvable:$false] %s871_s11 }
  0x1b   : > { %408 = vmatpush1.bf16.msra.mxu0 %v824_v7  ;;  %757 = vmatpush3.bf16.msra.mxu1 %v856_v23  ;;  %v226_v43 = vpack.c.bf16 %v224_v41, %v224_v41  ;;  %v864_v45 = vld [vmem:[%s1198_s3 + $0x30] sm:$0xff]   ;;  %v866_v47 = vld [vmem:[%s1198_s3 + $0x38] sm:$0xff]   ;;  %v253_v51 = vld [vmem:[%s1197_s2] sm:$0x3]  ;;  %s867_s13 = scalar_lea.vmem %s1155_s7, 128  ;;  %s873_s14 = scalar_lea.vmem %s872_s11, 256 }
  0x1c   : > { %409 = vmatprep.subr.bf16.mxu0 %v825_v8  ;;  %729 = vmatprep.mubr.msk.bf16.mxu0 %vm390_vm0, %v227_v13  ;;  %v396_v42 = vsel %vm394_vm1, %v726_v40, 0  ;;  %v258_v53 = vrot.slane %v253_v51, %v257_v50  ;;  %v262_v54 = vrot.slane %v253_v51, %v261_v52  ;;  %v730_v2 = vld [vmem:[%s1199_s4] ss:$0 sm:$0xff]  ;;  %p868_p11 = scmp.ne.s32.totalorder %s1155_s7, %s867_s13  ;;  %p874_p0 = scmp.lt.s32.totalorder %s1155_s7, %s872_s11 }
  0x1d   : > { %758 = vmatprep.subr.bf16.mxu1 %v857_v24  ;;  %p875_p1 = scmp.lt.s32.totalorder %s873_s14, %s867_s13 }
  0x1e   : > { %p869_p12 = pnand %p868_p11, %p1000_p5 }
  0x1f   : > { %410 = vmatpush1.bf16.msra.mxu0 %v827_v9  ;;  %759 = vmatpush3.bf16.msra.mxu1 %v858_v26  ;;  %p876_p2 = por %p875_p1, %p874_p0 }
  0x20   : > { %411 = vmatprep.subr.bf16.mxu0 %v828_v10  ;;  %760 = vmatprep.subr.bf16.mxu1 %v859_v28  ;;  %p870_p13 = pneg %p869_p12 }
  0x22   : > { %p877_p3 = pnand %p876_p2, %p870_p13 }
  0x23   : > { %412 = vmatpush1.bf16.msra.mxu0 %v830_v12  ;;  %761 = vmatpush3.bf16.msra.mxu1 %v860_v30 }
  0x24   : > { %413 = vmatprep.subr.bf16.mxu0 %v831_v17  ;;  %762 = vmatprep.subr.bf16.mxu1 %v861_v31 }
  0x27   : > { %414 = vmatpush1.bf16.msra.mxu0 %v833_v20  ;;  %763 = vmatpush3.bf16.msra.mxu1 %v862_v34 }
  0x28   : > { %415 = vmatprep.subr.bf16.mxu0 %v834_v21  ;;  %764 = vmatprep.subr.bf16.mxu1 %v863_v44 }
  0x2b   : > { %416 = vmatpush1.bf16.msra.mxu0 %v836_v22  ;;  %765 = vmatpush3.bf16.msra.mxu1 %v864_v45 }
  0x2c   : > { %417 = vmatprep.subr.bf16.mxu0 %v837_v25  ;;  %766 = vmatprep.subr.bf16.mxu1 %v865_v46 }
  0x2f   : > { %418 = vmatpush1.bf16.msra.mxu0 %v839_v27  ;;  %767 = vmatpush3.bf16.msra.mxu1 %v866_v47 }
  0x30   : > { %419 = vmatprep.subr.bf16.mxu0 %v840_v29 }
  0x33   : > { %420 = vmatpush1.bf16.msra.mxu0 %v842_v32 }
  0x34   : > { %421 = vmatprep.subr.bf16.mxu0 %v843_v33 }
  0x37   : > { %422 = vmatpush1.bf16.msra.mxu0 %v845_v35 }
  0x38   : > { %423 = vmatprep.subr.bf16.mxu0 %v846_v36 }
  0x3b   : > { %424 = vmatpush1.bf16.msra.mxu0 %v848_v38 }
  0x3c   : > { %728 = vmatprep.subr.msk.bf16.mxu0 %vm394_vm1, %v727_v39 }
  0x3f   : > { %426 = vmatpush1.bf16.msra.mxu0 %v396_v42 }
  0x42   : > { %434 = vmatmul.mubr.bf16.vlgmr.msra.gmra.mrb[0].mxu0 %v226_v43 }
 0x115   : > { %v435_v55 = vpop.f32.mrb[0].mxu0 }
 0x116   : > { %v436_v56 = vadd.f32 %v435_v55, %v258_v53  ;;  %v437_v57 = vpop.f32.mrb[1].mxu0 }
 0x117   : > { %v438_v58 = vadd.f32 %v437_v57, %v262_v54  ;;  %v439_v59 = vpop.f32.mrb[2].mxu0 }
 0x118   : > { %v442_v60 = vmax.f32 %v436_v56, 0.0  ;;  %v440_v61 = vpop.f32.mrb[3].mxu0 }
 0x119   : > { %v443_v62 = vmax.f32 %v438_v58, 0.0 }
 0x11a   : > { %v444_v0 = vpack.c.bf16 %v442_v60, %v442_v60 }
 0x11b   : > { %v445_v63 = vpack.c.bf16 %v443_v62, %v443_v62 }
 0x11d   : > { %613 = vmatprep.mubr.bf16.mxu1 %v445_v63 }
 0x11e   : > { %614 = vmatmul.mubr.bf16.vlgmr.msra.gmra.mrb[0].mxu1 %v444_v0 }
 0x1f1   : > { %v768_v1 = vpop.f32.mrb[0].mxu1 }
 0x1f2   : > { %v769_v3 = vpop.f32.mrb[1].mxu1 }
 0x1f3   : > { %v770_v4 = vadd.f32 %v769_v3, %v768_v1  ;;  %v771_v5 = vpop.f32.mrb[2].mxu1 }
 0x1f4   : > { %v772_v6 = vpop.f32.mrb[3].mxu1 }
 0x1f5   : > { %v616_v7 = vadd.f32 %v770_v4, %v730_v2 }
 0x1f7   : > { %621 = vst [vmem:[%s217_s6] sm:$0xff] %v616_v7 }
 0x1f8   : > { %880 = shalt.err (!%p877_p3)
}
 0x1f9   : > { %s881_s15 = scalar_lea.hbm %s1153_s10, 128  ;;  %s885_s23 = scalar_lea.hbm %s1200_s5, 256 }
 0x1fa   : > { %p882_p4 = scmp.ne.s32.totalorder %s1153_s10, %s881_s15  ;;  %p886_p9 = scmp.lt.u32.totalorder %s1153_s10, %s1200_s5 }
 0x1fb   : > { %p887_p10 = scmp.lt.u32.totalorder %s885_s23, %s881_s15  ;;  %p889_p12 = scmp.lt.u32.totalorder %s881_s15, %s1153_s10 }
 0x1fc   : > { %p883_p7 = pnand %p882_p4, %p1000_p5 }
 0x1fd   : > { %p888_p11 = por %p887_p10, %p886_p9 }
 0x1fe   : > { %p884_p8 = pneg %p883_p7 }
 0x1ff   : > { %p890_p13 = por %p889_p12, %p888_p11 }
 0x201   : > { %p891_p0 = pnand %p890_p13, %p884_p8 }
 0x203   : > { %894 = shalt.err (!%p891_p0)
}
 0x204   : > { %774 = dma.vmem_to_hbm [thread:$0]  (%p1000_p5), %s1155_s7, 128, %s1153_s10, %s623_s12  }
 0x205 PF: > { %p780_p1 = scmp.ge.s32.totalorder %s929_s21, 2  ;;  %s648_s30 = sand.u32 1, %s917_s18  }
 0x206   : > { %s649_s6 = scalar_lea.sflag [#allocation3], %s648_s30 }
 0x207   : > { %p777_p2 = pnand %p780_p1, %p1004_p6 }
 0x209   : > { %912 = dma.done.wait (!%p777_p2), %s649_s6, 128  }
 0x20a   : > { %914 = vsyncadd (!%p777_p2), %s649_s6, 4294967168  ;;  %p15_p3 = scmp.ge.s32.totalorder %s987_s24, 4   ;;  %s1203_s18 = smov %s921_s19 }
 0x20b   : > { %s1204_s19 = smov %s925_s20  ;;  %s1205_s20 = smov %s998_s27 }
 0x20c   : > { %s1206_s21 = smov %s987_s24  ;;  %17 = sbr.rel (!%p15_p3) target bundleno = 3 (0x3), region = 75 }
 0x213   :  { %654 = vsyncpa [#allocation3], 1 }
 0x214   :  { %656 = vsyncpa [#allocation3 + $0x1], 1 }

</bundles_post_ra>
